<compile_context>
chip_gen: v6e
topology: v6e:2x2x1
jax: 0.10.0
libtpu: 0.0.40
codegen_flags: <defaults>
</compile_context>

<pallas_src>
import functools
import math

import jax
import jax.numpy as jnp
from jax.experimental import pallas as pl
from jax.experimental.pallas import tpu as pltpu

_LOG2 = float(math.log(2.0))
_NEG_BIG = -1e30
_EPS_SQ = 1e-24  # (1e-12)^2 -> preserves F.normalize's x / max(||x||, 1e-12)


def _contrastive_kernel(zr_ref, zc_ref, loss_ref,
                        zrn_s, m_s, l_s, pos_s, *,
                        inv_temperature, n_total):
    i = pl.program_id(0)            # row-tile index
    j = pl.program_id(1)            # col-tile index (reduction axis, innermost)
    n_row = pl.num_programs(0)
    n_col = pl.num_programs(1)

    # ---- per-row-stripe init: normalize row tile once, reset accumulators ---
    @pl.when(j == 0)
    def _():
        zr = zr_ref[...].astype(jnp.float32)
        r_scale = jax.lax.rsqrt(
            jnp.maximum(jnp.sum(zr * zr, axis=-1, keepdims=True),
                        jnp.float32(_EPS_SQ))) * jnp.float32(inv_temperature)
        zrn_s[...] = (zr * r_scale).astype(jnp.bfloat16)
        m_s[...] = jnp.full(m_s.shape, _NEG_BIG, jnp.float32)
        l_s[...] = jnp.zeros(l_s.shape, jnp.float32)
        pos_s[...] = jnp.zeros(pos_s.shape, jnp.float32)

    @pl.when((i == 0) & (j == 0))
    def _():
        loss_ref[...] = jnp.zeros(loss_ref.shape, jnp.float32)

    # ---- normalize column tile (fresh every step) ----------------------------
    zc = zc_ref[...].astype(jnp.float32)
    c_scale = jax.lax.rsqrt(
        jnp.maximum(jnp.sum(zc * zc, axis=-1, keepdims=True),
                    jnp.float32(_EPS_SQ)))
    zc_n = (zc * c_scale).astype(jnp.bfloat16)

    # ---- bf16 MXU matmul, f32 accumulation, NT contraction (no transpose) ---
    sim = jax.lax.dot_general(
        zrn_s[...], zc_n,
        dimension_numbers=(((1,), (1,)), ((), ())),
        preferred_element_type=jnp.float32)          # (T, T), already / temp

    tr, tc = sim.shape
    lrow = jax.lax.broadcasted_iota(jnp.int32, (tr, tc), 0)
    lcol = jax.lax.broadcasted_iota(jnp.int32, (tr, tc), 1)

    is_diag = i == j
    is_next = j == (i + 1) % n_col

    # Self-similarity mask: only effective on the diagonal tile.
    sim_off = jnp.where(is_diag & (lrow == lcol), jnp.float32(_NEG_BIG), sim)

    # ---- online logsumexp over column tiles ---------------------------------
    m_prev = m_s[...]
    m_new = jnp.maximum(m_prev, jnp.max(sim_off, axis=-1, keepdims=True))
    alpha = jnp.exp(m_prev - m_new)
    p = jnp.exp(sim_off - m_new)
    l_s[...] = alpha * l_s[...] + jnp.sum(p, axis=-1, keepdims=True)
    m_s[...] = m_new

    # ---- positive ("label") logit: sim[r, (r+1) mod N] -----------------------
    # Row r's positive lives on the diagonal tile at (lr, lr+1) for lr < T-1,
    # and on the next column tile (wrapping around) at (T-1, 0).
    @pl.when(is_diag | is_next)
    def _():
        pos_mask = (is_diag & (lcol == lrow + 1)) | \
                   (is_next & (lrow == tr - 1) & (lcol == 0))
        pos_s[...] += jnp.sum(jnp.where(pos_mask, sim, 0.0), axis=-1,
                              keepdims=True)

    # ---- finalize a row stripe; accumulate the scalar loss in the output ----
    @pl.when(j == n_col - 1)
    def _():
        # logits = cat([S, S], dim=1) -> logsumexp gains log(2)
        lse = m_s[...] + jnp.log(l_s[...]) + jnp.float32(_LOG2)
        partial = jnp.sum(lse - pos_s[...])
        acc = loss_ref[...] + partial
        is_last = i == n_row - 1
        loss_ref[...] = jnp.where(is_last, acc * jnp.float32(1.0 / n_total), acc)


def _pick_block(n, target=512):
    """Largest tile that divides n, is a multiple of 8, and is <= target.

    Falls back to a single tile of size n (block == full dim is always legal).
    """
    if n <= target:
        return n
    t = target - (target % 8)
    while t >= 8:
        if n % t == 0:
            return t
        t -= 8
    return n


def contrastive_loss(z_i, z_j, temperature=0.07, block_size=None):
    """Pallas implementation of ContrastiveLoss.forward(z_i, z_j)."""
    # Reference drops the last row of z_i when len(z_i) is odd (static in JAX).
    if z_i.shape[0] % 2 != 0:
        z_i = z_i[:-1]
    # TODO(synk): the row/col BlockSpecs could read z_i / z_j directly (saving one
    # (N, D) HBM round-trip), but a BlockSpec cannot switch source arrays per grid
    # step, so the concat is kept.
    z = jnp.concatenate([z_i, z_j], axis=0)  # (N, D)
    n, d = z.shape

    t = _pick_block(n) if block_size is None else int(block_size)
    assert n % t == 0 and (t % 8 == 0 or t == n), (n, t)
    grid = (n // t, n // t)  # (row tiles, col tiles); col axis = reduction, last

    kernel = functools.partial(
        _contrastive_kernel,
        inv_temperature=1.0 / float(temperature),
        n_total=n,
    )

    out = pl.pallas_call(
        kernel,
        out_shape=jax.ShapeDtypeStruct((1, 1), jnp.float32),
        grid_spec=pltpu.PrefetchScalarGridSpec(
            num_scalar_prefetch=0,
            grid=grid,
            in_specs=[
                pl.BlockSpec((t, d), lambda i, j: (i, 0)),  # row tile of z
                pl.BlockSpec((t, d), lambda i, j: (j, 0)),  # col tile of z
            ],
            out_specs=pl.BlockSpec((1, 1), lambda i, j: (0, 0)),
            scratch_shapes=[
                pltpu.VMEM((t, d), jnp.bfloat16),  # cached normalized row tile
                pltpu.VMEM((t, 1), jnp.float32),   # running row max
                pltpu.VMEM((t, 1), jnp.float32),   # running row sum-exp
                pltpu.VMEM((t, 1), jnp.float32),   # positive logit per row
            ],
        ),
        compiler_params=pltpu.CompilerParams(
            # The scalar output is a single resident accumulator block shared by
            # all row stripes, so both axes stay "arbitrary" (no megacore race).
            dimension_semantics=("arbitrary", "arbitrary"),
            vmem_limit_bytes=64 * 1024 * 1024,
        ),
    )(z, z)
    return out[0, 0]


def _contrastive_loss_ref(z_i, z_j, temperature=0.07):
    """Pure-JAX f32 reference of the same (repaired) semantics, for validation."""
    if z_i.shape[0] % 2 != 0:
        z_i = z_i[:-1]

    def normalize(x):
        nrm = jnp.sqrt(jnp.sum(x * x, axis=-1, keepdims=True))
        return x / jnp.maximum(nrm, 1e-12)

    z = jnp.concatenate([normalize(z_i), normalize(z_j)], axis=0)
    n = z.shape[0]
    sim = (z @ z.T) / temperature
    mask = jnp.eye(n, dtype=bool)
    sim_masked = jnp.where(mask, -jnp.inf, sim)
    lse = jax.scipy.special.logsumexp(sim_masked, axis=-1) + jnp.log(2.0)
    sel = sim[jnp.arange(n), (jnp.arange(n) + 1) % n]
    return jnp.mean(lse - sel)


if __name__ == "__main__":
    key = jax.random.PRNGKey(0)

    # (batch, dim, block_size_override)
    cases = [
        (2, 32, None),   # N=4: single-tile path (block == full dims)
        (64, 128, 64),   # N=128 with 64-row tiles: 2x2 grid -> exercises the
                         # online-logsumexp reset/update, row-tile cache reuse,
                         # and positive-wrap logic
    ]
    for idx, (b, d, blk) in enumerate(cases):
        k_i, k_j = jax.random.split(jax.random.fold_in(key, idx))
        z_i = jax.random.normal(k_i, (b, d), dtype=jnp.float32)
        z_j = jax.random.normal(k_j, (b, d), dtype=jnp.float32)

        loss = jax.block_until_ready(
            contrastive_loss(z_i, z_j, temperature=0.07, block_size=blk))
        ref = jax.block_until_ready(
            _contrastive_loss_ref(z_i, z_j, temperature=0.07))

        assert jnp.isfinite(loss), (idx, loss)
        # bf16 matmul (f32 accumulation) -> slightly looser tolerance than f32.
        assert jnp.allclose(loss, ref, atol=5e-2, rtol=5e-2), (idx, loss, ref)

    print("KERNEL_OK")
</pallas_src>

<mosaic_0001>
module attributes {stable_mosaic.version = 11 : i64} {
  func.func @_contrastive_kernel(%arg0: i32, %arg1: i32, %arg2: memref<4x32xf32, #tpu.memory_space<vmem>>, %arg3: memref<4x32xf32, #tpu.memory_space<vmem>>, %arg4: memref<1x1xf32, #tpu.memory_space<vmem>>, %arg5: memref<4x32xbf16, #tpu.memory_space<vmem>>, %arg6: memref<4x1xf32, #tpu.memory_space<vmem>>, %arg7: memref<4x1xf32, #tpu.memory_space<vmem>>, %arg8: memref<4x1xf32, #tpu.memory_space<vmem>>) attributes {dimension_semantics = [#tpu.dimension_semantics<arbitrary>, #tpu.dimension_semantics<arbitrary>], iteration_bounds = array<i64: 1, 1>, scalar_prefetch = 0 : i64, scratch_operands = 4 : i64, tpu.core_type = #tpu.core_type<tc>, window_params = [{transform_indices = @transform_0, window_bounds = array<i64: 4, 32>}, {transform_indices = @transform_1, window_bounds = array<i64: 4, 32>}, {pipeline_mode = #tpu.pipeline_mode<synchronous>, transform_indices = @transform_2, window_bounds = array<i64: 1, 1>}]} {
    %c0_i32 = arith.constant 0 : i32
    %0 = arith.cmpi eq, %arg1, %c0_i32 : i32
    %1 = arith.extui %0 : i1 to i32
    %c0_i32_0 = arith.constant 0 : i32
    %2 = arith.cmpi ne, %1, %c0_i32_0 : i32
    scf.if %2 {
      %c0_29 = arith.constant 0 : index
      %c0_30 = arith.constant 0 : index
      %62 = vector.load %arg2[%c0_29, %c0_30] : memref<4x32xf32, #tpu.memory_space<vmem>>, vector<4x32xf32>
      %63 = arith.mulf %62, %62 : vector<4x32xf32>
      %cst_31 = arith.constant dense<0.000000e+00> : vector<4xf32>
      %64 = vector.multi_reduction <add>, %63, %cst_31 [1] : vector<4x32xf32> to vector<4xf32>
      %65 = vector.shape_cast %64 : vector<4xf32> to vector<4x1xf32>
      %cst_32 = arith.constant 1.000000e-24 : f32
      %66 = vector.broadcast %cst_32 : f32 to vector<4x1xf32>
      %67 = arith.maximumf %65, %66 : vector<4x1xf32>
      %68 = math.rsqrt %67 : vector<4x1xf32>
      %cst_33 = arith.constant 14.2857141 : f32
      %69 = vector.broadcast %cst_33 : f32 to vector<4x1xf32>
      %70 = arith.mulf %68, %69 : vector<4x1xf32>
      %71 = vector.broadcast %70 : vector<4x1xf32> to vector<4x32xf32>
      %72 = arith.mulf %62, %71 : vector<4x32xf32>
      %73 = arith.truncf %72 : vector<4x32xf32> to vector<4x32xbf16>
      %c0_34 = arith.constant 0 : index
      %c0_35 = arith.constant 0 : index
      %74 = vector.load %arg5[%c0_34, %c0_35] : memref<4x32xbf16, #tpu.memory_space<vmem>>, vector<4x32xbf16>
      tpu.vector_store %arg5[%c0_34, %c0_35], %73 {strides = array<i32>} : memref<4x32xbf16, #tpu.memory_space<vmem>>, vector<4x32xbf16>,
      %cst_36 = arith.constant -1.000000e+30 : f32
      %75 = vector.broadcast %cst_36 : f32 to vector<4x1xf32>
      %c0_37 = arith.constant 0 : index
      %c0_38 = arith.constant 0 : index
      %76 = vector.load %arg6[%c0_37, %c0_38] : memref<4x1xf32, #tpu.memory_space<vmem>>, vector<4x1xf32>
      tpu.vector_store %arg6[%c0_37, %c0_38], %75 {strides = array<i32>} : memref<4x1xf32, #tpu.memory_space<vmem>>, vector<4x1xf32>,
      %cst_39 = arith.constant 0.000000e+00 : f32
      %77 = vector.broadcast %cst_39 : f32 to vector<4x1xf32>
      %c0_40 = arith.constant 0 : index
      %c0_41 = arith.constant 0 : index
      %78 = vector.load %arg7[%c0_40, %c0_41] : memref<4x1xf32, #tpu.memory_space<vmem>>, vector<4x1xf32>
      tpu.vector_store %arg7[%c0_40, %c0_41], %77 {strides = array<i32>} : memref<4x1xf32, #tpu.memory_space<vmem>>, vector<4x1xf32>,
      %cst_42 = arith.constant 0.000000e+00 : f32
      %79 = vector.broadcast %cst_42 : f32 to vector<4x1xf32>
      %c0_43 = arith.constant 0 : index
      %c0_44 = arith.constant 0 : index
      %80 = vector.load %arg8[%c0_43, %c0_44] : memref<4x1xf32, #tpu.memory_space<vmem>>, vector<4x1xf32>
      tpu.vector_store %arg8[%c0_43, %c0_44], %79 {strides = array<i32>} : memref<4x1xf32, #tpu.memory_space<vmem>>, vector<4x1xf32>,
    } else {
    }
    %c0_i32_1 = arith.constant 0 : i32
    %3 = arith.cmpi eq, %arg0, %c0_i32_1 : i32
    %c0_i32_2 = arith.constant 0 : i32
    %4 = arith.cmpi eq, %arg1, %c0_i32_2 : i32
    %5 = arith.andi %3, %4 : i1
    %6 = arith.extui %5 : i1 to i32
    %c0_i32_3 = arith.constant 0 : i32
    %7 = arith.cmpi ne, %6, %c0_i32_3 : i32
    scf.if %7 {
      %cst_29 = arith.constant 0.000000e+00 : f32
      %62 = vector.broadcast %cst_29 : f32 to vector<1x1xf32>
      %c0_30 = arith.constant 0 : index
      %c0_31 = arith.constant 0 : index
      %63 = vector.load %arg4[%c0_30, %c0_31] : memref<1x1xf32, #tpu.memory_space<vmem>>, vector<1x1xf32>
      tpu.vector_store %arg4[%c0_30, %c0_31], %62 {strides = array<i32>} : memref<1x1xf32, #tpu.memory_space<vmem>>, vector<1x1xf32>,
    } else {
    }
    %c0 = arith.constant 0 : index
    %c0_4 = arith.constant 0 : index
    %8 = vector.load %arg3[%c0, %c0_4] : memref<4x32xf32, #tpu.memory_space<vmem>>, vector<4x32xf32>
    %9 = arith.mulf %8, %8 : vector<4x32xf32>
    %cst = arith.constant dense<0.000000e+00> : vector<4xf32>
    %10 = vector.multi_reduction <add>, %9, %cst [1] : vector<4x32xf32> to vector<4xf32>
    %11 = vector.shape_cast %10 : vector<4xf32> to vector<4x1xf32>
    %cst_5 = arith.constant 1.000000e-24 : f32
    %12 = vector.broadcast %cst_5 : f32 to vector<4x1xf32>
    %13 = arith.maximumf %11, %12 : vector<4x1xf32>
    %14 = math.rsqrt %13 : vector<4x1xf32>
    %15 = vector.broadcast %14 : vector<4x1xf32> to vector<4x32xf32>
    %16 = arith.mulf %8, %15 : vector<4x32xf32>
    %17 = arith.truncf %16 : vector<4x32xf32> to vector<4x32xbf16>
    %c0_6 = arith.constant 0 : index
    %c0_7 = arith.constant 0 : index
    %18 = vector.load %arg5[%c0_6, %c0_7] : memref<4x32xbf16, #tpu.memory_space<vmem>>, vector<4x32xbf16>
    %cst_8 = arith.constant dense<0.000000e+00> : vector<4x4xf32>
    %19 = tpu.matmul %18, %17, %cst_8 {dimension_numbers = #tpu.dot_dimension_numbers<[1], [1], [0], [0], [0, 0, 1, 0], [], []>} : vector<4x32xbf16>, vector<4x32xbf16>, vector<4x4xf32> -> vector<4x4xf32>
    %20 = tpu.iota {dimensions = array<i32: 0>} : vector<4x4xi32>
    %21 = tpu.iota {dimensions = array<i32: 1>} : vector<4x4xi32>
    %22 = arith.cmpi eq, %arg0, %arg1 : i32
    %c1_i32 = arith.constant 1 : i32
    %23 = arith.addi %arg0, %c1_i32 : i32
    %c1_i32_9 = arith.constant 1 : i32
    %c0_i32_10 = arith.constant 0 : i32
    %24 = arith.cmpi eq, %c1_i32_9, %c0_i32_10 : i32
    %c1_i32_11 = arith.constant 1 : i32
    %25 = arith.select %24, %c1_i32_11, %c1_i32_9 : i32
    %26 = arith.remsi %23, %25 : i32
    %c0_i32_12 = arith.constant 0 : i32
    %27 = arith.cmpi ne, %26, %c0_i32_12 : i32
    %c0_i32_13 = arith.constant 0 : i32
    %28 = arith.cmpi slt, %26, %c0_i32_13 : i32
    %c0_i32_14 = arith.constant 0 : i32
    %29 = arith.cmpi slt, %25, %c0_i32_14 : i32
    %30 = arith.xori %28, %29 : i1
    %31 = arith.andi %30, %27 : i1
    %32 = arith.addi %26, %25 : i32
    %33 = arith.select %31, %32, %26 : i32
    %34 = arith.cmpi eq, %arg1, %33 : i32
    %35 = arith.cmpi eq, %20, %21 : vector<4x4xi32>
    %36 = vector.broadcast %22 : i1 to vector<4x4xi1>
    %37 = arith.andi %36, %35 : vector<4x4xi1>
    %cst_15 = arith.constant -1.000000e+30 : f32
    %38 = vector.broadcast %cst_15 : f32 to vector<4x4xf32>
    %39 = arith.select %37, %38, %19 : vector<4x4xi1>, vector<4x4xf32>
    %c0_16 = arith.constant 0 : index
    %c0_17 = arith.constant 0 : index
    %40 = vector.load %arg6[%c0_16, %c0_17] : memref<4x1xf32, #tpu.memory_space<vmem>>, vector<4x1xf32>
    %cst_18 = arith.constant dense<0xFF800000> : vector<4xf32>
    %41 = vector.multi_reduction <maximumf>, %39, %cst_18 [1] : vector<4x4xf32> to vector<4xf32>
    %42 = vector.shape_cast %41 : vector<4xf32> to vector<4x1xf32>
    %43 = arith.maximumf %40, %42 : vector<4x1xf32>
    %44 = arith.subf %40, %43 : vector<4x1xf32>
    %45 = math.exp %44 : vector<4x1xf32>
    %46 = vector.broadcast %43 : vector<4x1xf32> to vector<4x4xf32>
    %47 = arith.subf %39, %46 : vector<4x4xf32>
    %48 = math.exp %47 : vector<4x4xf32>
    %c0_19 = arith.constant 0 : index
    %c0_20 = arith.constant 0 : index
    %49 = vector.load %arg7[%c0_19, %c0_20] : memref<4x1xf32, #tpu.memory_space<vmem>>, vector<4x1xf32>
    %50 = arith.mulf %45, %49 : vector<4x1xf32>
    %cst_21 = arith.constant dense<0.000000e+00> : vector<4xf32>
    %51 = vector.multi_reduction <add>, %48, %cst_21 [1] : vector<4x4xf32> to vector<4xf32>
    %52 = vector.shape_cast %51 : vector<4xf32> to vector<4x1xf32>
    %53 = arith.addf %50, %52 : vector<4x1xf32>
    %c0_22 = arith.constant 0 : index
    %c0_23 = arith.constant 0 : index
    %54 = vector.load %arg7[%c0_22, %c0_23] : memref<4x1xf32, #tpu.memory_space<vmem>>, vector<4x1xf32>
    tpu.vector_store %arg7[%c0_22, %c0_23], %53 {strides = array<i32>} : memref<4x1xf32, #tpu.memory_space<vmem>>, vector<4x1xf32>,
    %c0_24 = arith.constant 0 : index
    %c0_25 = arith.constant 0 : index
    %55 = vector.load %arg6[%c0_24, %c0_25] : memref<4x1xf32, #tpu.memory_space<vmem>>, vector<4x1xf32>
    tpu.vector_store %arg6[%c0_24, %c0_25], %43 {strides = array<i32>} : memref<4x1xf32, #tpu.memory_space<vmem>>, vector<4x1xf32>,
    %56 = arith.ori %22, %34 : i1
    %57 = arith.extui %56 : i1 to i32
    %c0_i32_26 = arith.constant 0 : i32
    %58 = arith.cmpi ne, %57, %c0_i32_26 : i32
    scf.if %58 {
      %c1_i32_29 = arith.constant 1 : i32
      %62 = vector.broadcast %c1_i32_29 : i32 to vector<4x4xi32>
      %63 = arith.addi %20, %62 : vector<4x4xi32>
      %64 = arith.cmpi eq, %21, %63 : vector<4x4xi32>
      %65 = vector.broadcast %22 : i1 to vector<4x4xi1>
      %66 = arith.andi %65, %64 : vector<4x4xi1>
      %c3_i32 = arith.constant 3 : i32
      %67 = vector.broadcast %c3_i32 : i32 to vector<4x4xi32>
      %68 = arith.cmpi eq, %20, %67 : vector<4x4xi32>
      %69 = vector.broadcast %34 : i1 to vector<4x4xi1>
      %70 = arith.andi %69, %68 : vector<4x4xi1>
      %c0_i32_30 = arith.constant 0 : i32
      %71 = vector.broadcast %c0_i32_30 : i32 to vector<4x4xi32>
      %72 = arith.cmpi eq, %21, %71 : vector<4x4xi32>
      %73 = arith.andi %70, %72 : vector<4x4xi1>
      %74 = arith.ori %66, %73 : vector<4x4xi1>
      %c0_31 = arith.constant 0 : index
      %c0_32 = arith.constant 0 : index
      %75 = vector.load %arg8[%c0_31, %c0_32] : memref<4x1xf32, #tpu.memory_space<vmem>>, vector<4x1xf32>
      %cst_33 = arith.constant 0.000000e+00 : f32
      %76 = vector.broadcast %cst_33 : f32 to vector<4x4xf32>
      %77 = arith.select %74, %19, %76 : vector<4x4xi1>, vector<4x4xf32>
      %cst_34 = arith.constant dense<0.000000e+00> : vector<4xf32>
      %78 = vector.multi_reduction <add>, %77, %cst_34 [1] : vector<4x4xf32> to vector<4xf32>
      %79 = vector.shape_cast %78 : vector<4xf32> to vector<4x1xf32>
      %80 = arith.addf %75, %79 : vector<4x1xf32>
      %c0_35 = arith.constant 0 : index
      %c0_36 = arith.constant 0 : index
      %81 = vector.load %arg8[%c0_35, %c0_36] : memref<4x1xf32, #tpu.memory_space<vmem>>, vector<4x1xf32>
      tpu.vector_store %arg8[%c0_35, %c0_36], %80 {strides = array<i32>} : memref<4x1xf32, #tpu.memory_space<vmem>>, vector<4x1xf32>,
    } else {
    }
    %c0_i32_27 = arith.constant 0 : i32
    %59 = arith.cmpi eq, %arg1, %c0_i32_27 : i32
    %60 = arith.extui %59 : i1 to i32
    %c0_i32_28 = arith.constant 0 : i32
    %61 = arith.cmpi ne, %60, %c0_i32_28 : i32
    scf.if %61 {
      %c0_29 = arith.constant 0 : index
      %c0_30 = arith.constant 0 : index
      %62 = vector.load %arg6[%c0_29, %c0_30] : memref<4x1xf32, #tpu.memory_space<vmem>>, vector<4x1xf32>
      %c0_31 = arith.constant 0 : index
      %c0_32 = arith.constant 0 : index
      %63 = vector.load %arg7[%c0_31, %c0_32] : memref<4x1xf32, #tpu.memory_space<vmem>>, vector<4x1xf32>
      %64 = math.log %63 : vector<4x1xf32>
      %65 = arith.addf %62, %64 : vector<4x1xf32>
      %cst_33 = arith.constant 0.693147182 : f32
      %66 = vector.broadcast %cst_33 : f32 to vector<4x1xf32>
      %67 = arith.addf %65, %66 : vector<4x1xf32>
      %c0_34 = arith.constant 0 : index
      %c0_35 = arith.constant 0 : index
      %68 = vector.load %arg8[%c0_34, %c0_35] : memref<4x1xf32, #tpu.memory_space<vmem>>, vector<4x1xf32>
      %69 = arith.subf %67, %68 : vector<4x1xf32>
      %70 = vector.shape_cast %69 : vector<4x1xf32> to vector<1x4x1xf32>
      %cst_36 = arith.constant dense<0.000000e+00> : vector<1xf32>
      %71 = vector.multi_reduction <add>, %70, %cst_36 [1, 2] : vector<1x4x1xf32> to vector<1xf32>
      %72 = vector.shape_cast %71 : vector<1xf32> to vector<1x1x1xf32>
      %73 = vector.extract %72[0, 0, 0] : f32 from vector<1x1x1xf32>
      %c0_37 = arith.constant 0 : index
      %c0_38 = arith.constant 0 : index
      %74 = vector.load %arg4[%c0_37, %c0_38] : memref<1x1xf32, #tpu.memory_space<vmem>>, vector<1x1xf32>
      %75 = vector.broadcast %73 : f32 to vector<1x1xf32>
      %76 = arith.addf %74, %75 : vector<1x1xf32>
      %c0_i32_39 = arith.constant 0 : i32
      %77 = arith.cmpi eq, %arg0, %c0_i32_39 : i32
      %cst_40 = arith.constant 2.500000e-01 : f32
      %78 = vector.broadcast %cst_40 : f32 to vector<1x1xf32>
      %79 = arith.mulf %76, %78 : vector<1x1xf32>
      %80 = arith.select %77, %79, %76 : vector<1x1xf32>
      %c0_41 = arith.constant 0 : index
      %c0_42 = arith.constant 0 : index
      %81 = vector.load %arg4[%c0_41, %c0_42] : memref<1x1xf32, #tpu.memory_space<vmem>>, vector<1x1xf32>
      tpu.vector_store %arg4[%c0_41, %c0_42], %80 {strides = array<i32>} : memref<1x1xf32, #tpu.memory_space<vmem>>, vector<1x1xf32>,
    } else {
    }
    return
  }
  func.func @transform_0(%arg0: i32, %arg1: i32) -> (i32, i32) {
    %c0_i32 = arith.constant 0 : i32
    %c0_i32_0 = arith.constant 0 : i32
    return %arg0, %c0_i32 : i32, i32
  }
  func.func @transform_1(%arg0: i32, %arg1: i32) -> (i32, i32) {
    %c0_i32 = arith.constant 0 : i32
    %c0_i32_0 = arith.constant 0 : i32
    return %arg1, %c0_i32 : i32, i32
  }
  func.func @transform_2(%arg0: i32, %arg1: i32) -> (i32, i32) {
    %c0_i32 = arith.constant 0 : i32
    %c0_i32_0 = arith.constant 0 : i32
    %c0_i32_1 = arith.constant 0 : i32
    return %c0_i32, %c0_i32_0 : i32, i32
  }
}

</mosaic_0001>

<bundles_post_ra>
// kernel: tpu_custom_call.1
= control target key start
LH: loop header
LB: loop body
LE: loop exit
PB: predicated region body
PF: predicated region fallthrough
CT: control target
= control target key end

     0   :  { %7 = vsyncpa [#allocation7], 0  ;;  %s374_s0 = inlined_call_operand.hbm [shape: f32[4,32], index: 0, kind: input, shape index: {}]   ;;  %s375_s1 = inlined_call_operand.hbm [shape: f32[4,32], index: 1, kind: input, shape index: {}]   ;;  %s376_s2 = inlined_call_operand.hbm [shape: f32[1,1], index: 2, kind: output, shape index: {}]  }
   0x1   :  { %8 = vsyncpa [#allocation10], 0 }
   0x2   :  { %9 = vsyncpa [#allocation8], 0  ;;  %s325_s9 = smov [#allocation6]   ;;  %s326_s11 = smov [#allocation9]  }
   0x3   :  { %s16_s10 = sshll.u32 %s325_s9, 4  ;;  %s26_s12 = sshll.u32 %s326_s11, 4  ;;  %s17_s10 = int_to_ptr.vmem [resolvable:$true] %s16_s10  ;;  %s27_s12 = int_to_ptr.vmem [resolvable:$true] %s26_s12 }
   0x4   :  { %s267_s13 = scalar_lea.vmem %s17_s10, 64  ;;  %p272_p1 = scmp.lt.s32.totalorder %s17_s10, %s17_s10 }
   0x5   :  { %p268_p0 = scmp.ne.s32.totalorder %s17_s10, %s267_s13  ;;  %p273_p2 = scmp.lt.s32.totalorder %s267_s13, %s267_s13 }
   0x7   :  { %p274_p3 = por %p273_p2, %p272_p1 }
   0x9   :  { %p275_p4 = pnand %p274_p3, %p268_p0 }
   0xb   :  { %278 = shalt.err (!%p275_p4)
}
   0xc   :  { %19 = dma.hbm_to_vmem [thread:$0]  %s374_s0, 64, %s17_s10, [#allocation7]  }
   0xd   :  { %s287_s16 = scalar_lea.vmem %s27_s12, 64  ;;  %p292_p6 = scmp.lt.s32.totalorder %s27_s12, %s27_s12 }
   0xe   :  { %p288_p5 = scmp.ne.s32.totalorder %s27_s12, %s287_s16  ;;  %p293_p7 = scmp.lt.s32.totalorder %s287_s16, %s287_s16 }
  0x10   :  { %p294_p8 = por %p293_p7, %p292_p6 }
  0x12   :  { %p295_p9 = pnand %p294_p8, %p288_p5 }
  0x14   :  { %298 = shalt.err (!%p295_p9)
}
  0x15   :  { %29 = dma.hbm_to_vmem [thread:$0]  %s375_s1, 64, %s27_s12, [#allocation10]  }
  0x16   :  { %319 = dma.done.wait [#allocation7], 64  }
  0x17   :  { %320 = vsyncadd [#allocation7], 4294967232 }
  0x18   :  { %321 = dma.done.wait [#allocation10], 64  }
  0x19   :  { %322 = vsyncadd [#allocation10], 4294967232  ;;  %v41_v0 = vld [vmem:[#allocation6] sm:$0xf]  ;;  %vm43_vm0 = vcmask 257024   ;;  %vm54_vm1 = vcmask 3072   ;;  %v123_v20 = vlaneseq }
  0x1a   :  { %v65_v1 = vld [vmem:[#allocation9] sm:$0xf]  ;;  %v42_v2 = vmul.f32 %v41_v0, %v41_v0  ;;  %vm63_vm2 = vcmask 0   ;;  %v327_v6 = vmov 0.0   ;;  %vm328_vm3 = vmmov 0   ;;  %s331_s1 = smov [#allocation11]  }
  0x1b   :  { %v66_v3 = vmul.f32 %v65_v1, %v65_v1  ;;  %56 = vst.msk [vmem:[#allocation4] sm:$0xf] %vm54_vm1, %v327_v6  ;;  %57 = vst.msk [vmem:[#allocation5] sm:$0xf] %vm54_vm1, %v327_v6  ;;  %232 = vmatprep.subr.bf16.mxu0 %v327_v6  ;;  %234 = vmatprep.mubr.msk.bf16.mxu0 %vm328_vm3, %v327_v6  ;;  %vm52_vm4 = vcmask 254976   ;;  %vm76_vm5 = vcmask 261120  }
  0x1c   :  { %v44_v4 = vsel %vm43_vm0, %v42_v2, 0.0  ;;  %64 = vst.msk [vmem:[#allocation11] sm:$0x1] %vm63_vm2, %v327_v6  ;;  %v124_v21 = vshrl.u32 %v123_v20, 7  ;;  %v126_v22 = vand.u32 127, %v123_v20  ;;  %vm135_vm12 = vcmask 27648  }
  0x1d   :  { %45 = vadd.xlane.f32.xlu0 %v44_v4  ;;  %v68_v5 = vsel %vm43_vm0, %v66_v3, 0.0  ;;  %v329_v25 = vmov -1e+30   ;;  %v330_v33 = vmov 0   ;;  %s219_s19 = sshll.u32 %s331_s1, 4  ;;  %s220_s19 = int_to_ptr.vmem [resolvable:$true] %s219_s19 }
  0x1e   :  { %v164_v23 = vadd.s32 1, %v124_v21  ;;  %vm167_vm6 = vcmp.eq.s32.totalorder %v124_v21, 3  ;;  %vm172_vm7 = vcmp.eq.s32.totalorder %v126_v22, 0  ;;  %55 = vst.msk [vmem:[#allocation3] sm:$0xf] %vm54_vm1, %v329_v25  ;;  %vm128_vm11 = vcmp.eq.s32.totalorder %v124_v21, %v126_v22  ;;  %247 = vset.pattern.permute.xlu1 %v330_v33  ;;  %248 = vset.pattern.permute.xlu0 %v330_v33  ;;  %s299_s20 = scalar_lea.vmem %s220_s19, 16  ;;  %p304_p11 = scmp.lt.s32.totalorder %s220_s19, %s220_s19 }
  0x1f   :  { %vm173_vm9 = vmand %vm167_vm6, %vm172_vm7  ;;  %p300_p10 = scmp.ne.s32.totalorder %s220_s19, %s299_s20  ;;  %s303_s21 = scalar_lea.vmem %s220_s19, 32 }
  0x20   :  { %vm165_vm8 = vcmp.eq.s32.totalorder %v126_v22, %v164_v23  ;;  %p305_p12 = scmp.lt.s32.totalorder %s303_s21, %s299_s20 }
  0x21   :  { %69 = vadd.xlane.f32.xlu0 %v68_v5  ;;  %vm356_vm10 = vmor %vm165_vm8, %vm173_vm9 }
  0x22   :  { %v151_v46 = vld [vmem:[#allocation4] sm:$0xf]  ;;  %v175_v50 = vld [vmem:[#allocation5] sm:$0xf]  ;;  %p306_p13 = por %p305_p12, %p304_p11 }
  0x23   :  { %v203_v5 = vld [vmem:[#allocation11] sm:$0x1] }
  0x24   :  { %p307_p0 = pnand %p306_p13, %p300_p10 }
  0x25   :  { %v134_v34 = vld [vmem:[#allocation3] sm:$0xf] }
  0xa6   :  { %v46_v7 = vpop.xlane.xlu0 %45 }
  0xa7   :  { %v47_v8 = vmax.f32 %v46_v7, 1e-24 }
  0xa9   :  { %249 = vrsqrt.f32 %v47_v8 }
  0xaa   :  { %v70_v9 = vpop.xlane.xlu0 %69 }
  0xab   :  { %v71_v10 = vmax.f32 %v70_v9, 1e-24 }
  0xad   :  { %251 = vrsqrt.f32 %v71_v10 }
  0xb6   :  { %v250_v11 = vpop.eup %249 }
  0xb7   :  { %v49_v12 = vmul.f32 14.285714, %v250_v11 }
  0xb9   :  { %v50_v13 = vmul.f32 %v49_v12, %v41_v0 }
  0xba   :  { %v252_v14 = vpop.eup %251 }
  0xbb   :  { %v51_v15 = vpack.c.bf16 %v50_v13, %v50_v13  ;;  %v73_v16 = vmul.f32 %v252_v14, %v65_v1 }
  0xbd   :  { %53 = vst.msk [vmem:[#allocation2] sm:$0x3] %vm52_vm4, %v51_v15  ;;  %v74_v17 = vpack.c.bf16 %v73_v16, %v73_v16 }
  0xbf   :  { %v81_v18 = vsel %vm76_vm5, %v74_v17, 0 }
  0xc0   :  { %233 = vmatpush3.bf16.xpose.msra.mxu0 %v81_v18 }
  0xc4   :  { %v75_v19 = vld [vmem:[#allocation2] sm:$0x3] }
  0xc7   :  { %235 = vmatmul.mubr.msk.bf16.vlgmr.msra.gmra.mxu0 %vm76_vm5, %v75_v19 }
 0x187   :  { %v117_v26 = vpop.f32.mrf.mxu0 }
 0x188   :  { %v133_v27 = vsel %vm128_vm11, -1e+30, %v117_v26  ;;  %v176_v28 = vsel %vm356_vm10, %v117_v26, 0.0 }
 0x189   :  { %v236_v29 = vpop.f32.mrf.mxu0  ;;  %v136_v30 = vsel %vm135_vm12, %v133_v27, -inf  ;;  %v177_v43 = vsel %vm135_vm12, %v176_v28, 0.0 }
 0x18a   :  { %137 = vmax.xlane.f32.xlu1 %v136_v30 }
 0x18b   :  { %v120_v31 = vpop.f32.mrf.mxu0 }
 0x18d   :  { %v237_v32 = vpop.f32.mrf.mxu0 }
 0x213   :  { %v138_v35 = vpop.xlane.xlu1 %137 }
 0x214   :  { %v139_v36 = vmax.f32 %v134_v34, %v138_v35 }
 0x216   :  { %v140_v37 = vsub.f32 %v134_v34, %v139_v36  ;;  %159 = vst.msk [vmem:[#allocation3] sm:$0xf] %vm54_vm1, %v139_v36  ;;  %145 = vperm.xlu1 %247, %v139_v36  }
 0x218   :  { %v141_v44 = vmul.f32 1.442695, %v140_v37 }
 0x21d   :  { %v185_v56 = vld [vmem:[#allocation3] sm:$0xf] }
 0x291   :  { %v146_v38 = vpop.permute.xlu1 %145 }
 0x292   :  { %v148_v39 = vsub.f32 %v133_v27, %v146_v38 }
 0x294   :  { %v149_v40 = vmul.f32 1.442695, %v148_v39 }
 0x296   :  { %253 = vpow2.f32 %v149_v40 }
 0x297   :  { %255 = vpow2.f32 %v141_v44 }
 0x2a3   :  { %v254_v41 = vpop.eup %253 }
 0x2a4   :  { %v153_v42 = vsel %vm135_vm12, %v254_v41, 0.0  ;;  %v256_v45 = vpop.eup %255 }
 0x2a5   :  { %154 = vadd.xlane.f32.xlu0 %v153_v42  ;;  %v152_v47 = vmul.f32 %v256_v45, %v151_v46 }
 0x2a9   :  { %178 = vadd.xlane.f32.xlu0 %v177_v43 }
 0x32e   :  { %v155_v48 = vpop.xlane.xlu0 %154 }
 0x32f   :  { %v156_v49 = vadd.f32 %v155_v48, %v152_v47 }
 0x331   :  { %158 = vst.msk [vmem:[#allocation4] sm:$0xf] %vm54_vm1, %v156_v49 }
 0x332   :  { %v179_v51 = vpop.xlane.xlu0 %178 }
 0x333   :  { %v180_v52 = vadd.f32 %v179_v51, %v175_v50 }
 0x335   :  { %181 = vst.msk [vmem:[#allocation5] sm:$0xf] %vm54_vm1, %v180_v52 }
 0x338   :  { %v186_v53 = vld [vmem:[#allocation4] sm:$0xf] }
 0x339   :  { %257 = vlog2.f32 %v186_v53 }
 0x33c   :  { %v191_v59 = vld [vmem:[#allocation5] sm:$0xf] }
 0x346   :  { %v258_v54 = vpop.eup %257 }
 0x347   :  { %v188_v55 = vmul.f32 0.6931472, %v258_v54 }
 0x349   :  { %v189_v57 = vadd.f32 %v188_v55, %v185_v56 }
 0x34b   :  { %v190_v58 = vadd.f32 0.6931472, %v189_v57 }
 0x34d   :  { %v192_v60 = vsub.f32 %v190_v58, %v191_v59 }
 0x34f   :  { %v193_v61 = vsel %vm54_vm1, %v192_v60, 0.0 }
 0x350   :  { %194 = vadd.xlane.f32.xlu0 %v193_v61 }
 0x3d9   :  { %v195_v62 = vpop.xlane.xlu0 %194 }
 0x3da   :  { %v196_v63 = vrot.slane %v195_v62, 4 }
 0x3dc   :  { %v197_v0 = vadd.f32 %v196_v63, %v195_v62 }
 0x3de   :  { %v198_v1 = vrot.slane %v197_v0, 2 }
 0x3e0   :  { %v199_v2 = vadd.f32 %v198_v1, %v197_v0 }
 0x3e2   :  { %v200_v3 = vrot.slane %v199_v2, 1 }
 0x3e4   :  { %v201_v4 = vadd.f32 %v200_v3, %v199_v2 }
 0x3e6   :  { %238 = vpush %v201_v4 }
 0x417   :  { %s239_s0 = spop %238 }
 0x418   :  { %v204_v6 = vstv %s239_s0 }
 0x419   :  { %v205_v7 = vadd.f32 %v204_v6, %v203_v5 }
 0x41b   :  { %v206_v8 = vmul.f32 0.25, %v205_v7 }
 0x41d   :  { %212 = vst.msk [vmem:[#allocation11] sm:$0x1] %vm63_vm2, %v206_v8 }
 0x41e   :  { %310 = shalt.err (!%p307_p0)
}
 0x41f   :  { %222 = dma.vmem_to_hbm [thread:$0]  %s220_s19, 16, %s376_s2, [#allocation8]  }
 0x420   :  { %323 = dma.done.wait [#allocation8], 16  }
 0x421   :  { %324 = vsyncadd [#allocation8], 4294967280 }
 0x422   :  { %226 = vsyncpa [#allocation7], 1 }
 0x423   :  { %227 = vsyncpa [#allocation10], 1 }
 0x424   :  { %228 = vsyncpa [#allocation8], 1 }

</bundles_post_ra>
